<compile_context>
chip_gen: v6e
topology: v6e:2x2x1
jax: 0.10.0
libtpu: 0.0.40
codegen_flags: <defaults>
</compile_context>

<pallas_src>
import functools

import jax
import jax.numpy as jnp
from jax.experimental import pallas as pl
from jax.experimental.pallas import tpu as pltpu


def _attention_kernel(enc_ref, dec_ref, w_enc_t_ref, w_dec_t_ref,
                      b_sum_ref, w_lin_ref, ctx_ref, alpha_ref, *, n_valid):
    enc = enc_ref[...]                               # (Bt, Np, E)
    bt, n_pad, e_dim = enc.shape
    a_dim = w_lin_ref.shape[1]

    # ---- attn1: flatten (Bt, Np) into M so the MXU sees one big matmul ----
    enc2d = enc.reshape(bt * n_pad, e_dim)
    attn1 = jnp.dot(enc2d, w_enc_t_ref[...],
                    preferred_element_type=jnp.float32).reshape(bt, n_pad, a_dim)

    # ---- attn2 with folded (b_enc + b_dec) bias ----
    attn2 = jnp.dot(dec_ref[...], w_dec_t_ref[...],
                    preferred_element_type=jnp.float32) + b_sum_ref[...]   # (Bt, A)

    h = jnp.maximum(attn1 + attn2[:, None, :], 0.0)                        # (Bt, Np, A) f32

    # ---- A -> 1 projection as a lane reduction (b_lin dropped: softmax shift-inv) ----
    scores = jnp.sum(h * w_lin_ref[...][None, :, :], axis=-1)              # (Bt, Np)

    # Mask the lanes introduced by padding N up to a multiple of 128.
    if n_valid < n_pad:
        lane = jax.lax.broadcasted_iota(jnp.int32, (bt, n_pad), 1)
        scores = jnp.where(lane < n_valid, scores, -1e30)

    # ---- softmax over regions (dim=1) ----
    m = jnp.max(scores, axis=1, keepdims=True)
    ex = jnp.exp(scores - m)
    denom = jnp.sum(ex, axis=1, keepdims=True)
    alpha = ex * pl.reciprocal(denom, approx=True)                         # (Bt, Np) f32

    # ---- context on the MXU: (Bt,1,Np) @ (Bt,Np,E) -> (Bt,E) ----
    ctx = jnp.einsum('bqn,bne->bqe',
                     alpha[:, None, :].astype(enc.dtype), enc,
                     preferred_element_type=jnp.float32)[:, 0, :]

    ctx_ref[...] = ctx.astype(ctx_ref.dtype)
    alpha_ref[...] = alpha.astype(alpha_ref.dtype)


def attention_forward(encoder_out, decoder_hidden, params, *,
                      compute_dtype=None,
                      vmem_budget_bytes=12 * 1024 * 1024):
    """encoder_out: (B, N, E), decoder_hidden: (B, D) -> (context (B,E), alpha (B,N))."""
    B, N, E = encoder_out.shape
    _, D = decoder_hidden.shape
    A = params['w_enc'].shape[0]
    out_dtype = encoder_out.dtype

    # ---- host-side parameter prep (pre-transposed weights, folded biases) ----
    mm_dtype = compute_dtype if compute_dtype is not None else encoder_out.dtype
    w_enc_t = params['w_enc'].T.astype(mm_dtype)                 # (E, A)
    w_dec_t = params['w_dec'].T.astype(mm_dtype)                 # (D, A)
    b_sum = (params['b_enc'] + params['b_dec']).reshape(1, A).astype(jnp.float32)
    w_lin = params['w_lin'].reshape(1, A).astype(jnp.float32)
    # b_lin dropped entirely: constant pre-softmax shift has no effect on alpha/context.

    enc = encoder_out.astype(mm_dtype)
    dec = decoder_hidden.astype(mm_dtype)

    # ---- lane-dense alpha: pad N up to a multiple of 128 (masked in-kernel) ----
    n_pad = max(128, ((N + 127) // 128) * 128)
    if n_pad != N:
        enc = jnp.pad(enc, ((0, 0), (0, n_pad - N), (0, 0)))

    # ---- pick a batch tile that fits conservatively in scoped VMEM on all gens ----
    itemsize = jnp.dtype(mm_dtype).itemsize
    per_row = (2 * n_pad * E * itemsize      # double-buffered encoder block
               + 2 * n_pad * A * 4           # attn1 + relu intermediate (f32)
               + n_pad * E * 4               # context-matmul operand headroom (f32)
               + 2 * (E + n_pad) * 4)        # outputs
    bt = max(1, int(vmem_budget_bytes // per_row))
    if bt >= B:
        bt = B                               # single block covers the batch
    else:
        bt = max(8, (bt // 8) * 8)           # keep sublane-aligned output blocks
    b_pad = ((B + bt - 1) // bt) * bt
    if b_pad != B:
        enc = jnp.pad(enc, ((0, b_pad - B), (0, 0), (0, 0)))
        dec = jnp.pad(dec, ((0, b_pad - B), (0, 0)))

    grid = (b_pad // bt,)
    kernel = functools.partial(_attention_kernel, n_valid=N)

    ctx, alpha = pl.pallas_call(
        kernel,
        out_shape=(
            jax.ShapeDtypeStruct((b_pad, E), out_dtype),
            jax.ShapeDtypeStruct((b_pad, n_pad), out_dtype),
        ),
        grid_spec=pltpu.PrefetchScalarGridSpec(
            num_scalar_prefetch=0,
            grid=grid,
            in_specs=[
                pl.BlockSpec((bt, n_pad, E), lambda b: (b, 0, 0)),   # encoder block
                pl.BlockSpec((bt, D), lambda b: (b, 0)),             # decoder hidden
                # Parameters: constant index_map -> DMA'd once, kept VMEM-resident.
                pl.BlockSpec((E, A), lambda b: (0, 0)),
                pl.BlockSpec((D, A), lambda b: (0, 0)),
                pl.BlockSpec((1, A), lambda b: (0, 0)),
                pl.BlockSpec((1, A), lambda b: (0, 0)),
            ],
            out_specs=[
                pl.BlockSpec((bt, E), lambda b: (b, 0)),
                pl.BlockSpec((bt, n_pad), lambda b: (b, 0)),
            ],
        ),
        compiler_params=pltpu.CompilerParams(
            dimension_semantics=("parallel",),     # megacore sharding on v7x
        ),
    )(enc, dec, w_enc_t, w_dec_t, b_sum, w_lin)

    return ctx[:B], alpha[:B, :N]


def init_params(key, encoder_dim, decoder_dim, attn_dim):
    k1, k2, k3, k4, k5, k6 = jax.random.split(key, 6)
    # PyTorch nn.Linear stores weight as (out_features, in_features).
    return {
        'w_enc': jax.random.normal(k1, (attn_dim, encoder_dim), jnp.float32) * 0.1,
        'b_enc': jax.random.normal(k2, (attn_dim,), jnp.float32) * 0.1,
        'w_dec': jax.random.normal(k3, (attn_dim, decoder_dim), jnp.float32) * 0.1,
        'b_dec': jax.random.normal(k4, (attn_dim,), jnp.float32) * 0.1,
        'w_lin': jax.random.normal(k5, (1, attn_dim), jnp.float32) * 0.1,
        'b_lin': jax.random.normal(k6, (1,), jnp.float32) * 0.1,
    }


def reference_forward(encoder_out, decoder_hidden, params):
    attn1 = encoder_out @ params['w_enc'].T + params['b_enc']
    attn2 = decoder_hidden @ params['w_dec'].T + params['b_dec']
    h = jnp.maximum(attn1 + attn2[:, None, :], 0.0)
    scores = (h @ params['w_lin'].T).squeeze(-1) + params['b_lin'][0]
    alpha = jax.nn.softmax(scores, axis=1)
    ctx = jnp.sum(encoder_out * alpha[:, :, None], axis=1)
    return ctx, alpha


if __name__ == "__main__":
    B, N = 2, 16              # batch, num encoder regions (e.g. 4x4 spatial)
    encoder_dim, decoder_dim, attn_dim = 32, 48, 64

    key = jax.random.PRNGKey(0)
    kp, ke, kd = jax.random.split(key, 3)
    params = init_params(kp, encoder_dim, decoder_dim, attn_dim)
    encoder_out = jax.random.normal(ke, (B, N, encoder_dim), jnp.float32)
    decoder_hidden = jax.random.normal(kd, (B, decoder_dim), jnp.float32)

    ctx, alpha = attention_forward(encoder_out, decoder_hidden, params)
    jax.block_until_ready((ctx, alpha))

    ctx_ref, alpha_ref = reference_forward(encoder_out, decoder_hidden, params)
    # Tolerance covers the EUP approximate-reciprocal softmax normalization (~2^-12 rel).
    assert jnp.allclose(ctx, ctx_ref, atol=1e-3, rtol=1e-3)
    assert jnp.allclose(alpha, alpha_ref, atol=1e-3, rtol=1e-3)

    print("KERNEL_OK")
</pallas_src>

<mosaic_0001>
module attributes {stable_mosaic.version = 11 : i64} {
  func.func @_attention_kernel(%arg0: i32, %arg1: memref<2x128x32xf32, #tpu.memory_space<vmem>>, %arg2: memref<2x48xf32, #tpu.memory_space<vmem>>, %arg3: memref<32x64xf32, #tpu.memory_space<vmem>>, %arg4: memref<48x64xf32, #tpu.memory_space<vmem>>, %arg5: memref<1x64xf32, #tpu.memory_space<vmem>>, %arg6: memref<1x64xf32, #tpu.memory_space<vmem>>, %arg7: memref<2x32xf32, #tpu.memory_space<vmem>>, %arg8: memref<2x128xf32, #tpu.memory_space<vmem>>) attributes {dimension_semantics = [#tpu.dimension_semantics<parallel>], iteration_bounds = array<i64: 1>, scalar_prefetch = 0 : i64, scratch_operands = 0 : i64, tpu.core_type = #tpu.core_type<tc>, window_params = [{transform_indices = @transform_0, window_bounds = array<i64: 2, 128, 32>}, {transform_indices = @transform_1, window_bounds = array<i64: 2, 48>}, {pipeline_mode = #tpu.pipeline_mode<synchronous>, transform_indices = @transform_2, window_bounds = array<i64: 32, 64>}, {pipeline_mode = #tpu.pipeline_mode<synchronous>, transform_indices = @transform_3, window_bounds = array<i64: 48, 64>}, {pipeline_mode = #tpu.pipeline_mode<synchronous>, transform_indices = @transform_4, window_bounds = array<i64: 1, 64>}, {pipeline_mode = #tpu.pipeline_mode<synchronous>, transform_indices = @transform_5, window_bounds = array<i64: 1, 64>}, {transform_indices = @transform_6, window_bounds = array<i64: 2, 32>}, {transform_indices = @transform_7, window_bounds = array<i64: 2, 128>}]} {
    %c0 = arith.constant 0 : index
    %c0_0 = arith.constant 0 : index
    %c0_1 = arith.constant 0 : index
    %0 = vector.load %arg1[%c0, %c0_0, %c0_1] : memref<2x128x32xf32, #tpu.memory_space<vmem>>, vector<2x128x32xf32>
    %1 = vector.shape_cast %0 : vector<2x128x32xf32> to vector<256x32xf32>
    %c0_2 = arith.constant 0 : index
    %c0_3 = arith.constant 0 : index
    %2 = vector.load %arg3[%c0_2, %c0_3] : memref<32x64xf32, #tpu.memory_space<vmem>>, vector<32x64xf32>
    %cst = arith.constant dense<0.000000e+00> : vector<256x64xf32>
    %3 = tpu.matmul %1, %2, %cst {dimension_numbers = #tpu.dot_dimension_numbers<[1], [0], [0], [1], [0, 0, 1, 1], [], []>} : vector<256x32xf32>, vector<32x64xf32>, vector<256x64xf32> -> vector<256x64xf32>
    %4 = vector.shape_cast %3 : vector<256x64xf32> to vector<2x128x64xf32>
    %c0_4 = arith.constant 0 : index
    %c0_5 = arith.constant 0 : index
    %5 = vector.load %arg2[%c0_4, %c0_5] : memref<2x48xf32, #tpu.memory_space<vmem>>, vector<2x48xf32>
    %c0_6 = arith.constant 0 : index
    %c0_7 = arith.constant 0 : index
    %6 = vector.load %arg4[%c0_6, %c0_7] : memref<48x64xf32, #tpu.memory_space<vmem>>, vector<48x64xf32>
    %cst_8 = arith.constant dense<0.000000e+00> : vector<2x64xf32>
    %7 = tpu.matmul %5, %6, %cst_8 {dimension_numbers = #tpu.dot_dimension_numbers<[1], [0], [0], [1], [0, 0, 1, 1], [], []>} : vector<2x48xf32>, vector<48x64xf32>, vector<2x64xf32> -> vector<2x64xf32>
    %c0_9 = arith.constant 0 : index
    %c0_10 = arith.constant 0 : index
    %8 = vector.load %arg5[%c0_9, %c0_10] : memref<1x64xf32, #tpu.memory_space<vmem>>, vector<1x64xf32>
    %9 = vector.broadcast %8 : vector<1x64xf32> to vector<2x64xf32>
    %10 = arith.addf %7, %9 : vector<2x64xf32>
    %11 = vector.shape_cast %10 : vector<2x64xf32> to vector<2x1x64xf32>
    %12 = vector.broadcast %11 : vector<2x1x64xf32> to vector<2x128x64xf32>
    %13 = arith.addf %4, %12 : vector<2x128x64xf32>
    %cst_11 = arith.constant 0.000000e+00 : f32
    %14 = vector.broadcast %cst_11 : f32 to vector<2x128x64xf32>
    %15 = arith.maximumf %13, %14 : vector<2x128x64xf32>
    %c0_12 = arith.constant 0 : index
    %c0_13 = arith.constant 0 : index
    %16 = vector.load %arg6[%c0_12, %c0_13] : memref<1x64xf32, #tpu.memory_space<vmem>>, vector<1x64xf32>
    %17 = vector.shape_cast %16 : vector<1x64xf32> to vector<1x1x64xf32>
    %18 = vector.broadcast %17 : vector<1x1x64xf32> to vector<2x128x64xf32>
    %19 = arith.mulf %15, %18 : vector<2x128x64xf32>
    %cst_14 = arith.constant dense<0.000000e+00> : vector<2x128xf32>
    %20 = vector.multi_reduction <add>, %19, %cst_14 [2] : vector<2x128x64xf32> to vector<2x128xf32>
    %21 = tpu.iota {dimensions = array<i32: 1>} : vector<2x128xi32>
    %c16_i32 = arith.constant 16 : i32
    %22 = vector.broadcast %c16_i32 : i32 to vector<2x128xi32>
    %23 = arith.cmpi slt, %21, %22 : vector<2x128xi32>
    %cst_15 = arith.constant -1.000000e+30 : f32
    %24 = vector.broadcast %cst_15 : f32 to vector<2x128xf32>
    %25 = arith.select %23, %20, %24 : vector<2x128xi1>, vector<2x128xf32>
    %cst_16 = arith.constant dense<0xFF800000> : vector<2xf32>
    %26 = vector.multi_reduction <maximumf>, %25, %cst_16 [1] : vector<2x128xf32> to vector<2xf32>
    %27 = vector.shape_cast %26 : vector<2xf32> to vector<2x1xf32>
    %28 = vector.broadcast %27 : vector<2x1xf32> to vector<2x128xf32>
    %29 = arith.subf %25, %28 : vector<2x128xf32>
    %30 = math.exp %29 : vector<2x128xf32>
    %cst_17 = arith.constant dense<0.000000e+00> : vector<2xf32>
    %31 = vector.multi_reduction <add>, %30, %cst_17 [1] : vector<2x128xf32> to vector<2xf32>
    %32 = vector.shape_cast %31 : vector<2xf32> to vector<2x1xf32>
    %33 = tpu.reciprocal %32 {approx = true} : vector<2x1xf32> -> vector<2x1xf32>
    %34 = vector.broadcast %33 : vector<2x1xf32> to vector<2x128xf32>
    %35 = arith.mulf %30, %34 : vector<2x128xf32>
    %36 = vector.shape_cast %35 : vector<2x128xf32> to vector<2x1x128xf32>
    "tpu.trace_start"() <{level = 10 : i32, message = "bqn,bne->bqe"}> : () -> ()
    %cst_18 = arith.constant dense<0.000000e+00> : vector<2x1x32xf32>
    %37 = tpu.matmul %36, %0, %cst_18 {dimension_numbers = #tpu.dot_dimension_numbers<[2], [1], [1], [2], [0, 0, 0, 1, 1, 2], [0], [0]>} : vector<2x1x128xf32>, vector<2x128x32xf32>, vector<2x1x32xf32> -> vector<2x1x32xf32>
    "tpu.trace_stop"() : () -> ()
    %38 = vector.shape_cast %37 : vector<2x1x32xf32> to vector<2x32xf32>
    %c0_19 = arith.constant 0 : index
    %c0_20 = arith.constant 0 : index
    %39 = vector.load %arg7[%c0_19, %c0_20] : memref<2x32xf32, #tpu.memory_space<vmem>>, vector<2x32xf32>
    tpu.vector_store %arg7[%c0_19, %c0_20], %38 {strides = array<i32>} : memref<2x32xf32, #tpu.memory_space<vmem>>, vector<2x32xf32>,
    %c0_21 = arith.constant 0 : index
    %c0_22 = arith.constant 0 : index
    %40 = vector.load %arg8[%c0_21, %c0_22] : memref<2x128xf32, #tpu.memory_space<vmem>>, vector<2x128xf32>
    tpu.vector_store %arg8[%c0_21, %c0_22], %35 {strides = array<i32>} : memref<2x128xf32, #tpu.memory_space<vmem>>, vector<2x128xf32>,
    return
  }
  func.func @transform_0(%arg0: i32) -> (i32, i32, i32) {
    %c0_i32 = arith.constant 0 : i32
    %c0_i32_0 = arith.constant 0 : i32
    %c0_i32_1 = arith.constant 0 : i32
    return %arg0, %c0_i32, %c0_i32_0 : i32, i32, i32
  }
  func.func @transform_1(%arg0: i32) -> (i32, i32) {
    %c0_i32 = arith.constant 0 : i32
    %c0_i32_0 = arith.constant 0 : i32
    return %arg0, %c0_i32 : i32, i32
  }
  func.func @transform_2(%arg0: i32) -> (i32, i32) {
    %c0_i32 = arith.constant 0 : i32
    %c0_i32_0 = arith.constant 0 : i32
    %c0_i32_1 = arith.constant 0 : i32
    return %c0_i32, %c0_i32_0 : i32, i32
  }
  func.func @transform_3(%arg0: i32) -> (i32, i32) {
    %c0_i32 = arith.constant 0 : i32
    %c0_i32_0 = arith.constant 0 : i32
    %c0_i32_1 = arith.constant 0 : i32
    return %c0_i32, %c0_i32_0 : i32, i32
  }
  func.func @transform_4(%arg0: i32) -> (i32, i32) {
    %c0_i32 = arith.constant 0 : i32
    %c0_i32_0 = arith.constant 0 : i32
    %c0_i32_1 = arith.constant 0 : i32
    return %c0_i32, %c0_i32_0 : i32, i32
  }
  func.func @transform_5(%arg0: i32) -> (i32, i32) {
    %c0_i32 = arith.constant 0 : i32
    %c0_i32_0 = arith.constant 0 : i32
    %c0_i32_1 = arith.constant 0 : i32
    return %c0_i32, %c0_i32_0 : i32, i32
  }
  func.func @transform_6(%arg0: i32) -> (i32, i32) {
    %c0_i32 = arith.constant 0 : i32
    %c0_i32_0 = arith.constant 0 : i32
    return %arg0, %c0_i32 : i32, i32
  }
  func.func @transform_7(%arg0: i32) -> (i32, i32) {
    %c0_i32 = arith.constant 0 : i32
    %c0_i32_0 = arith.constant 0 : i32
    return %arg0, %c0_i32 : i32, i32
  }
}

</mosaic_0001>

<bundles_post_ra>
// kernel: tpu_custom_call.1
= control target key start
LH: loop header
LB: loop body
LE: loop exit
PB: predicated region body
PF: predicated region fallthrough
CT: control target
= control target key end

     0   :  { %13 = vsyncpa [#allocation3], 0  ;;  %vm63_vm0 = vcmask 261120   ;;  %v1460_v11 = vmov 0.0   ;;  %s2067_s0 = inlined_call_operand.vmem [shape: f32[2,128,32], index: 0, kind: input, shape index: {}]   ;;  %s2068_s1 = inlined_call_operand.vmem [shape: f32[2,48], index: 1, kind: input, shape index: {}]   ;;  %s2069_s2 = inlined_call_operand.vmem [shape: f32[32,64], index: 2, kind: input, shape index: {}]   ;;  %s2070_s3 = inlined_call_operand.vmem [shape: f32[48,64], index: 3, kind: input, shape index: {}]   ;;  %s2071_s4 = inlined_call_operand.vmem [shape: f32[1,64], index: 4, kind: input, shape index: {}]   ;;  %s2072_s5 = inlined_call_operand.vmem [shape: f32[1,64], index: 5, kind: input, shape index: {}]   ;;  %s2073_s6 = inlined_call_operand.hbm [shape: f32[2,32], index: 6, kind: output, shape index: {0}]   ;;  %s2074_s7 = inlined_call_operand.hbm [shape: f32[2,128], index: 7, kind: output, shape index: {1}]  }
   0x1   :  { %v62_v0 = vld [vmem:[%s2069_s2 + $0x18] sm:$0xff]  ;;  %v61_v1 = vld [vmem:[%s2069_s2 + $0x10] sm:$0xff]  ;;  %v60_v2 = vld [vmem:[%s2069_s2 + $0x8] sm:$0xff] }
   0x2   :  { %1258 = vmatprep.subr.mxu0 %v62_v0  ;;  %1399 = vmatprep.subr.mxu1 %v62_v0  ;;  %v59_v3 = vld [vmem:[%s2069_s2] sm:$0xff]  ;;  %v1530_v6 = vld [vmem:[%s2067_s0 + $0x8] sm:$0xff]  ;;  %v1540_v8 = vld [vmem:[%s2067_s0 + $0x10] sm:$0xff] }
   0x3   :  { %1259 = vmatpush3.msra.mxu0 %v62_v0  ;;  %1403 = vmatpush3.msra.mxu1 %v62_v0  ;;  %v1520_v4 = vld [vmem:[%s2067_s0] sm:$0xff]  ;;  %v1535_v7 = vld [vmem:[%s2067_s0 + $0xc8] sm:$0xff]  ;;  %v1552_v10 = vld [vmem:[%s2067_s0 + $0xd0] sm:$0xff] }
   0x4   :  { %1260 = vmatprep.subr.mxu0 %v61_v1  ;;  %1400 = vmatprep.subr.mxu1 %v61_v1  ;;  %v1525_v5 = vld [vmem:[%s2067_s0 + $0xc0] sm:$0xff]  ;;  %v391_v9 = vld [vmem:[%s2070_s3 + $0x28] sm:$0xff]  ;;  %v1564_v12 = vld [vmem:[%s2067_s0 + $0x18] sm:$0xff] }
   0x5   :  { %1261 = vmatpush3.msra.mxu0 %v61_v1  ;;  %1404 = vmatpush3.msra.mxu1 %v61_v1  ;;  %v1569_v13 = vld [vmem:[%s2067_s0 + $0xd8] sm:$0xff]  ;;  %v390_v14 = vld [vmem:[%s2070_s3 + $0x20] sm:$0xff] }
   0x6   :  { %1262 = vmatprep.subr.mxu0 %v60_v2  ;;  %1401 = vmatprep.subr.mxu1 %v60_v2  ;;  %v1579_v15 = vld [vmem:[%s2067_s0 + $0x20] sm:$0xff]  ;;  %v389_v17 = vld [vmem:[%s2070_s3 + $0x18] sm:$0xff] }
   0x7   :  { %1263 = vmatpush3.msra.mxu0 %v60_v2  ;;  %1405 = vmatpush3.msra.mxu1 %v60_v2  ;;  %v55_v16 = vld [vmem:[%s2067_s0 + $0xe0] sm:$0xff] }
   0x8   :  { %1264 = vmatprep.subr.mxu0 %v59_v3  ;;  %1402 = vmatprep.subr.mxu1 %v59_v3 }
   0x9   :  { %1265 = vmatpush3.msra.mxu0 %v59_v3  ;;  %1406 = vmatpush3.msra.mxu1 %v59_v3 }
   0xa   :  { %1266 = vmatprep.mubr.msk.f32.mxu0 %vm63_vm0, %v1520_v4  ;;  %1302 = vmatprep.mubr.msk.f32.mxu1 %vm63_vm0, %v1525_v5 }
   0xb   :  { %1267 = vmatmul.mubr.msk.f32.vlgmr.msra.gmra.mxu0 %vm63_vm0, %v1530_v6  ;;  %1303 = vmatmul.mubr.msk.f32.vlgmr.msra.gmra.mxu1 %vm63_vm0, %v1535_v7 }
   0xc   :  { %1314 = vmatprep.subr.mxu1 %v1460_v11  ;;  %1269 = vmatprep.mubr.msk.f32.mxu0 %vm63_vm0, %v1540_v8 }
   0xd   :  { %1315 = vmatpush3.msra.mxu1 %v391_v9  ;;  %1305 = vmatprep.mubr.msk.f32.mxu1 %vm63_vm0, %v1552_v10 }
   0xe   :  { %1316 = vmatprep.subr.mxu1 %v1460_v11  ;;  %1364 = vmatprep.subr.mxu0 %v1460_v11 }
   0xf   :  { %1270 = vmatmul.mubr.msk.f32.gmra.mxu0 %vm63_vm0, %v1564_v12  ;;  %1306 = vmatmul.mubr.msk.f32.gmra.mxu1 %vm63_vm0, %v1569_v13 }
  0x10   :  { %14 = vsyncpa [#allocation5], 0  ;;  %1317 = vmatpush3.msra.mxu1 %v390_v14  ;;  %1272 = vmatprep.mubr.msk.f32.mxu0 %vm63_vm0, %v1579_v15  ;;  %v1598_v18 = vld [vmem:[%s2067_s0 + $0x28] sm:$0xff]  ;;  %v1608_v20 = vld [vmem:[%s2067_s0 + $0x30] sm:$0xff]  ;;  %vm399_vm1 = vcmask 392192   ;;  %vm1461_vm2 = vmmov 0   ;;  %v477_v54 = vlaneseq }
  0x11   :  { %v56_v19 = vld [vmem:[%s2067_s0 + $0xe8] sm:$0xff]  ;;  %1318 = vmatprep.subr.mxu1 %v1460_v11  ;;  %1308 = vmatprep.mubr.msk.f32.mxu1 %vm63_vm0, %v55_v16  ;;  %v58_v21 = vld [vmem:[%s2067_s0 + $0xf8] sm:$0xff]  ;;  %v388_v22 = vld [vmem:[%s2070_s3 + $0x10] sm:$0xff]  ;;  %v1462_v52 = vmov 1966171168   ;;  %vm609_vm3 = vcmask 523264  }
  0x12   :  { %1319 = vmatpush3.msra.mxu1 %v389_v17  ;;  %v57_v23 = vld [vmem:[%s2067_s0 + $0xf0] sm:$0xff]  ;;  %1365 = vmatpush3.msra.mxu0 %v58_v21  ;;  %v1628_v24 = vld [vmem:[%s2067_s0 + $0x38] sm:$0xff]  ;;  %v387_v25 = vld [vmem:[%s2070_s3 + $0x8] sm:$0xff]  ;;  %v475_v53 = vunpack.c.l.s4 %v1462_v52  ;;  %v1767_v60 = vshrl.u32 %v477_v54, 7  ;;  %vm750_vm4 = vcmask 130112   ;;  %vm757_vm5 = vcmask 195712  }
  0x13   :  { %1273 = vmatmul.mubr.msk.f32.gmra.mxu0 %vm63_vm0, %v1598_v18  ;;  %1309 = vmatmul.mubr.msk.f32.gmra.mxu1 %vm63_vm0, %v56_v19  ;;  %v1637_v26 = vld [vmem:[%s2067_s0 + $0x40] sm:$0xff]  ;;  %v36_v28 = vld [vmem:[%s2067_s0 + $0x48] sm:$0xff]  ;;  %v37_v30 = vld [vmem:[%s2067_s0 + $0x50] sm:$0xff]  ;;  %vm764_vm6 = vcmask 261312   ;;  %vm771_vm7 = vcmask 326912   ;;  %vm778_vm8 = vcmask 392512  }
  0x14   :  { %1320 = vmatprep.subr.mxu1 %v1460_v11  ;;  %1275 = vmatprep.mubr.msk.f32.mxu0 %vm63_vm0, %v1608_v20  ;;  %v386_v27 = vld [vmem:[%s2070_s3] sm:$0xff]  ;;  %v38_v31 = vld [vmem:[%s2067_s0 + $0x58] sm:$0xff]  ;;  %v40_v34 = vld [vmem:[%s2067_s0 + $0x68] sm:$0xff]  ;;  %v476_v59 = vunpack.c.0.s8 %v475_v53  ;;  %v498_v9 = vsub.s32 0, %v1767_v60  ;;  %vm785_vm9 = vcmask 458112   ;;  %vm792_vm10 = vcmask 523712  }
  0x15   :  { %1321 = vmatpush3.msra.mxu1 %v388_v22  ;;  %1311 = vmatprep.mubr.msk.f32.mxu1 %vm63_vm0, %v57_v23  ;;  %v385_v29 = vld [vmem:[%s2068_s1] sm:$0x3]  ;;  %v42_v33 = vld [vmem:[%s2067_s0 + $0x78] sm:$0xff]  ;;  %v41_v35 = vld [vmem:[%s2067_s0 + $0x70] sm:$0xff]  ;;  %vm799_vm11 = vcmask 589312   ;;  %vm806_vm12 = vcmask 654912  }
  0x16   :  { %1322 = vmatprep.subr.mxu1 %v1460_v11  ;;  %1366 = vmatprep.subr.mxu0 %v1460_v11  ;;  %v39_v32 = vld [vmem:[%s2067_s0 + $0x60] sm:$0xff]  ;;  %v44_v37 = vld [vmem:[%s2067_s0 + $0x88] sm:$0xff]  ;;  %v45_v38 = vld [vmem:[%s2067_s0 + $0x90] sm:$0xff]  ;;  %v1781_v2 = vsub.s32 %v476_v59, %v1767_v60  ;;  %vm813_vm13 = vcmask 720512   ;;  %vm820_vm14 = vcmask 786112   ;;  %vm827_vm15 = vcmask 851712  }
  0x17   :  { %1276 = vmatmul.mubr.msk.f32.gmra.mxu0 %vm63_vm0, %v1628_v24  ;;  %1312 = vmatmul.mubr.msk.f32.gmra.mxu1 %vm63_vm0, %v58_v21  ;;  %v43_v36 = vld [vmem:[%s2067_s0 + $0x80] sm:$0xff]  ;;  %v46_v39 = vld [vmem:[%s2067_s0 + $0x98] sm:$0xff]  ;;  %v49_v42 = vld [vmem:[%s2067_s0 + $0xb0] sm:$0xff] }
  0x18   :  { %1323 = vmatpush3.msra.mxu1 %v387_v25  ;;  %1278 = vmatprep.mubr.msk.f32.mxu0 %vm63_vm0, %v1637_v26  ;;  %v50_v40 = vld [vmem:[%s2067_s0 + $0xb8] sm:$0xff]  ;;  %v47_v41 = vld [vmem:[%s2067_s0 + $0xa0] sm:$0xff]  ;;  %v48_v43 = vld [vmem:[%s2067_s0 + $0xa8] sm:$0xff] }
  0x19   :  { %1324 = vmatprep.subr.mxu1 %v1460_v11  ;;  %1326 = vmatprep.mubr.msk.f32.mxu1 %vm1461_vm2, %v1460_v11  ;;  %v1178_v1 = vld [vmem:[%s2071_s4] ss:$0 sm:$0xff] }
  0x1a   :  { %1325 = vmatpush3.msra.mxu1 %v386_v27  ;;  %1367 = vmatpush3.msra.mxu0 %v57_v23  ;;  %v1808_v21 = vld [vmem:[%s2072_s5] ss:$0 sm:$0xff]  ;;  %s1463_s5 = smov [#allocation4]  }
  0x1b   :  { %1279 = vmatmul.mubr.msk.f32.gmra.mxu0 %vm63_vm0, %v36_v28  ;;  %1327 = vmatmul.mubr.msk.f32.vlgmr.msra.gmra.mxu1 %vm399_vm1, %v385_v29  ;;  %vm841_vm1 = vcmask 982912   ;;  %s1134_s13 = sshll.u32 %s1463_s5, 4  ;;  %s1135_s13 = int_to_ptr.vmem [resolvable:$true] %s1134_s13 }
  0x1c   :  { %1281 = vmatprep.mubr.msk.f32.mxu0 %vm63_vm0, %v37_v30  ;;  %1368 = vmatprep.subr.mxu0 %v1460_v11  ;;  %s1416_s14 = scalar_lea.vmem %s1135_s13, 32  ;;  %p1421_p1 = scmp.lt.s32.totalorder %s1135_s13, %s1135_s13 }
  0x1d   :  { %1369 = vmatpush3.msra.mxu0 %v56_v19  ;;  %1329 = vmatprep.subr.mxu1 %v1460_v11  ;;  %p1417_p0 = scmp.ne.s32.totalorder %s1135_s13, %s1416_s14  ;;  %p1422_p2 = scmp.lt.s32.totalorder %s1416_s14, %s1416_s14 }
  0x1e   :  { %1370 = vmatprep.subr.mxu0 %v1460_v11  ;;  %1330 = vmatpush3.msra.mxu1 %v42_v33 }
  0x1f   :  { %1282 = vmatmul.mubr.msk.f32.gmra.mxu0 %vm63_vm0, %v38_v31  ;;  %1331 = vmatprep.subr.mxu1 %v1460_v11  ;;  %p1423_p3 = por %p1422_p2, %p1421_p1 }
  0x20   :  { %1284 = vmatprep.mubr.msk.f32.mxu0 %vm63_vm0, %v39_v32  ;;  %1371 = vmatpush3.msra.mxu0 %v55_v16 }
  0x21   :  { %1372 = vmatprep.subr.mxu0 %v1460_v11  ;;  %1332 = vmatpush3.msra.mxu1 %v41_v35  ;;  %p1424_p4 = pnand %p1423_p3, %p1417_p0 }
  0x22   :  { %1373 = vmatpush3.msra.mxu0 %v1569_v13  ;;  %1333 = vmatprep.subr.mxu1 %v1460_v11 }
  0x23   :  { %1285 = vmatmul.mubr.msk.f32.gmra.mxu0 %vm63_vm0, %v40_v34  ;;  %1374 = vmatprep.subr.mxu0 %v1460_v11 }
  0x24   :  { %1287 = vmatprep.mubr.msk.f32.mxu0 %vm63_vm0, %v41_v35  ;;  %1375 = vmatpush3.msra.mxu0 %v1552_v10 }
  0x25   :  { %1376 = vmatprep.subr.mxu0 %v1460_v11  ;;  %1334 = vmatpush3.msra.mxu1 %v40_v34 }
  0x26   :  { %1377 = vmatpush3.msra.mxu0 %v1535_v7  ;;  %1335 = vmatprep.subr.mxu1 %v1460_v11 }
  0x27   :  { %1288 = vmatmul.mubr.msk.f32.gmra.mxu0 %vm63_vm0, %v42_v33  ;;  %1336 = vmatpush3.msra.mxu1 %v39_v32 }
  0x28   :  { %1290 = vmatprep.mubr.msk.f32.mxu0 %vm63_vm0, %v43_v36  ;;  %1378 = vmatprep.subr.mxu0 %v1460_v11 }
  0x29   :  { %1337 = vmatprep.subr.mxu1 %v1460_v11  ;;  %1379 = vmatpush3.msra.mxu0 %v1525_v5 }
  0x2a   :  { %1338 = vmatpush3.msra.mxu1 %v38_v31  ;;  %1380 = vmatprep.subr.mxu0 %v1460_v11 }
  0x2b   :  { %1291 = vmatmul.mubr.msk.f32.gmra.mxu0 %vm63_vm0, %v44_v37  ;;  %1339 = vmatprep.subr.mxu1 %v1460_v11 }
  0x2c   :  { %1293 = vmatprep.mubr.msk.f32.mxu0 %vm63_vm0, %v45_v38  ;;  %1340 = vmatpush3.msra.mxu1 %v37_v30 }
  0x2d   :  { %1381 = vmatpush3.msra.mxu0 %v50_v40  ;;  %1341 = vmatprep.subr.mxu1 %v1460_v11 }
  0x2e   :  { %1342 = vmatpush3.msra.mxu1 %v36_v28  ;;  %1382 = vmatprep.subr.mxu0 %v1460_v11 }
  0x2f   :  { %1294 = vmatmul.mubr.msk.f32.gmra.mxu0 %vm63_vm0, %v46_v39  ;;  %1343 = vmatprep.subr.mxu1 %v1460_v11 }
  0x30   :  { %1296 = vmatprep.mubr.msk.f32.mxu0 %vm63_vm0, %v47_v41  ;;  %1383 = vmatpush3.msra.mxu0 %v49_v42 }
  0x31   :  { %1344 = vmatpush3.msra.mxu1 %v1637_v26  ;;  %1384 = vmatprep.subr.mxu0 %v1460_v11 }
  0x32   :  { %1345 = vmatprep.subr.mxu1 %v1460_v11  ;;  %1385 = vmatpush3.msra.mxu0 %v48_v43 }
  0x33   :  { %1297 = vmatmul.mubr.msk.f32.gmra.mxu0 %vm63_vm0, %v48_v43  ;;  %1346 = vmatpush3.msra.mxu1 %v1628_v24 }
  0x34   :  { %1299 = vmatprep.mubr.msk.f32.mxu0 %vm63_vm0, %v49_v42  ;;  %1347 = vmatprep.subr.mxu1 %v1460_v11 }
  0x35   :  { %1348 = vmatpush3.msra.mxu1 %v1608_v20  ;;  %1386 = vmatprep.subr.mxu0 %v1460_v11 }
  0x36   :  { %1349 = vmatprep.subr.mxu1 %v1460_v11  ;;  %1387 = vmatpush3.msra.mxu0 %v47_v41 }
  0x37   :  { %1300 = vmatmul.mubr.msk.f32.gmra.mxu0 %vm63_vm0, %v50_v40  ;;  %1350 = vmatpush3.msra.mxu1 %v1598_v18  ;;  %vm834_vm0 = vcmask 917312  }
  0x38   :  { %1351 = vmatprep.subr.mxu1 %v1460_v11  ;;  %1388 = vmatprep.subr.mxu0 %v1460_v11 }
  0x39   :  { %1352 = vmatpush3.msra.mxu1 %v1579_v15  ;;  %1389 = vmatpush3.msra.mxu0 %v46_v39 }
  0x3a   :  { %1353 = vmatprep.subr.mxu1 %v1460_v11  ;;  %1390 = vmatprep.subr.mxu0 %v1460_v11 }
  0x3b   :  { %1354 = vmatpush3.msra.mxu1 %v1564_v12  ;;  %1391 = vmatpush3.msra.mxu0 %v45_v38 }
  0x3c   :  { %1355 = vmatprep.subr.mxu1 %v1460_v11  ;;  %1392 = vmatprep.subr.mxu0 %v1460_v11 }
  0x3d   :  { %1356 = vmatpush3.msra.mxu1 %v1540_v8  ;;  %1393 = vmatpush3.msra.mxu0 %v44_v37 }
  0x3e   :  { %1357 = vmatprep.subr.mxu1 %v1460_v11  ;;  %1361 = vmatprep.mubr.msk.f32.mxu1 %vm1461_vm2, %v1460_v11 }
  0x3f   :  { %1358 = vmatpush3.msra.mxu1 %v1530_v6  ;;  %1394 = vmatprep.subr.mxu0 %v1460_v11 }
  0x40   :  { %1359 = vmatprep.subr.mxu1 %v1460_v11  ;;  %1395 = vmatpush3.msra.mxu0 %v43_v36 }
  0x41   :  { %1360 = vmatpush3.msra.mxu1 %v1520_v4  ;;  %1396 = vmatprep.mubr.msk.f32.mxu0 %vm1461_vm2, %v1460_v11  ;;  %vm848_vm2 = vcmask 1048512  }
  0xcb   :  { %v1268_v44 = vpop.f32.mrf.mxu0  ;;  %v1304_v45 = vpop.f32.mrf.mxu1 }
  0xcd   :  { %v226_v46 = vpop.f32.mrf.mxu0  ;;  %v346_v47 = vpop.f32.mrf.mxu1 }
  0xcf   :  { %v1271_v48 = vpop.f32.mrf.mxu0  ;;  %v1307_v49 = vpop.f32.mrf.mxu1 }
  0xd1   :  { %v236_v50 = vpop.f32.mrf.mxu0  ;;  %v356_v51 = vpop.f32.mrf.mxu1 }
  0xd3   :  { %v1762_v55 = vpop.f32.mrf.mxu0  ;;  %v1764_v56 = vpop.f32.mrf.mxu1 }
  0xd5   :  { %v246_v57 = vpop.f32.mrf.mxu0  ;;  %v366_v58 = vpop.f32.mrf.mxu1 }
  0xd7   :  { %v1769_v61 = vpop.f32.mrf.mxu0  ;;  %v1771_v62 = vpop.f32.mrf.mxu1 }
  0xd9   :  { %v1773_v63 = vpop.f32.mrf.mxu0  ;;  %v1775_v0 = vpop.f32.mrf.mxu1 }
  0xdb   :  { %v1783_v3 = vpop.f32.mrf.mxu0  ;;  %v469_v4 = vpop.f32.mrf.mxu1 }
  0xdc   :  { %v470_v5 = vadd.f32 %v1178_v1, %v469_v4 }
  0xdd   :  { %v1785_v6 = vpop.f32.mrf.mxu0  ;;  %v1328_v7 = vpop.f32.mrf.mxu1 }
  0xde   :  { %v480_v8 = vrot.slane %v470_v5, %v1781_v2 }
  0xdf   :  { %v1789_v10 = vpop.f32.mrf.mxu0 }
  0xe0   :  { %v481_v11 = vcombine.high %v480_v8, %v480_v8  ;;  %v488_v12 = vrot.slane %v480_v8, %v1781_v2 }
  0xe1   :  { %v1792_v13 = vpop.f32.mrf.mxu0 }
  0xe2   :  { %v495_v14 = vrot.slane %v481_v11, %v1781_v2  ;;  %v1795_v15 = vrot.slane %v488_v12, %v498_v9 }
  0xe3   :  { %v1797_v16 = vpop.f32.mrf.mxu0 }
  0xe4   :  { %v1799_v17 = vrot.slane %v495_v14, %v498_v9  ;;  %v506_v18 = vadd.f32 %v1795_v15, %v226_v46  ;;  %v507_v19 = vadd.f32 %v1268_v44, %v1795_v15  ;;  %v508_v25 = vadd.f32 %v1795_v15, %v236_v50 }
  0xe5   :  { %v1803_v20 = vpop.f32.mrf.mxu0  ;;  %v509_v39 = vadd.f32 %v1271_v48, %v1795_v15  ;;  %v511_v59 = vadd.f32 %v1762_v55, %v1795_v15  ;;  %v512_v11 = vadd.f32 %v1795_v15, %v1773_v63 }
  0xe6   :  { %v538_v22 = vmax.f32 %v506_v18, 0.0  ;;  %v530_v23 = vadd.f32 %v1799_v17, %v346_v47  ;;  %v539_v24 = vmax.f32 %v507_v19, 0.0  ;;  %v531_v26 = vadd.f32 %v1304_v45, %v1799_v17 }
  0xe7   :  { %v532_v29 = vadd.f32 %v1799_v17, %v356_v51  ;;  %v1815_v30 = vpop.f32.mrf.mxu0  ;;  %v540_v35 = vmax.f32 %v508_v25, 0.0  ;;  %v533_v40 = vadd.f32 %v1307_v49, %v1799_v17  ;;  %v541_v44 = vmax.f32 %v509_v39, 0.0 }
  0xe8   :  { %v577_v27 = vmul.f32 %v1808_v21, %v538_v22  ;;  %v562_v28 = vmax.f32 %v530_v23, 0.0  ;;  %v563_v31 = vmax.f32 %v531_v26, 0.0  ;;  %v578_v34 = vmul.f32 %v1808_v21, %v539_v24 }
  0xe9   :  { %v564_v36 = vmax.f32 %v532_v29, 0.0  ;;  %v1824_v41 = vpop.f32.mrf.mxu0  ;;  %v579_v43 = vmul.f32 %v1808_v21, %v540_v35  ;;  %v510_v45 = vadd.f32 %v1795_v15, %v246_v57  ;;  %v565_v50 = vmax.f32 %v533_v40, 0.0 }
  0xea   :  { %v610_v32 = vsel %vm609_vm3, %v577_v27, 0.0  ;;  %v601_v33 = vmul.f32 %v1808_v21, %v562_v28  ;;  %v602_v38 = vmul.f32 %v1808_v21, %v563_v31  ;;  %v613_v42 = vsel %vm609_vm3, %v578_v34, 0.0 }
  0xeb   :  { %611 = vadd.xlane.f32.xlu0 %v610_v32  ;;  %v603_v47 = vmul.f32 %v1808_v21, %v564_v36  ;;  %v534_v48 = vadd.f32 %v1799_v17, %v366_v58  ;;  %v1292_v51 = vpop.f32.mrf.mxu0  ;;  %v616_v49 = vsel %vm609_vm3, %v579_v43, 0.0  ;;  %v580_v52 = vmul.f32 %v1808_v21, %v541_v44 }
  0xec   :  { %v682_v37 = vsel %vm609_vm3, %v601_v33, 0.0  ;;  %v685_v46 = vsel %vm609_vm3, %v602_v38, 0.0  ;;  %v542_v53 = vmax.f32 %v510_v45, 0.0  ;;  %v523_v57 = vadd.f32 %v1292_v51, %v1799_v17 }
  0xed   :  { %683 = vadd.xlane.f32.xlu1 %v682_v37  ;;  %v688_v1 = vsel %vm609_vm3, %v603_v47, 0.0  ;;  %v604_v4 = vmul.f32 %v1808_v21, %v565_v50  ;;  %v566_v5 = vmax.f32 %v534_v48, 0.0  ;;  %v306_v7 = vpop.f32.mrf.mxu0  ;;  %v619_v58 = vsel %vm609_vm3, %v580_v52, 0.0 }
  0xee   :  { %v581_v8 = vmul.f32 %v1808_v21, %v542_v53  ;;  %v543_v9 = vmax.f32 %v511_v59, 0.0  ;;  %v555_v55 = vmax.f32 %v523_v57, 0.0  ;;  %v522_v12 = vadd.f32 %v1799_v17, %v306_v7 }
  0xef   :  { %614 = vadd.xlane.f32.xlu0 %v613_v42  ;;  %v691_v14 = vsel %vm609_vm3, %v604_v4, 0.0  ;;  %v605_v18 = vmul.f32 %v1808_v21, %v566_v5  ;;  %v1295_v19 = vpop.f32.mrf.mxu0  ;;  %v544_v24 = vmax.f32 %v512_v11, 0.0  ;;  %v513_v25 = vadd.f32 %v1769_v61, %v1795_v15 }
  0xf0   :  { %v622_v22 = vsel %vm609_vm3, %v581_v8, 0.0  ;;  %v582_v23 = vmul.f32 %v1808_v21, %v543_v9  ;;  %v554_v63 = vmax.f32 %v522_v12, 0.0  ;;  %v525_v26 = vadd.f32 %v1295_v19, %v1799_v17 }
  0xf1   :  { %686 = vadd.xlane.f32.xlu1 %v685_v46  ;;  %v694_v27 = vsel %vm609_vm3, %v605_v18, 0.0  ;;  %v594_v28 = vmul.f32 %v1808_v21, %v555_v55  ;;  %v316_v29 = vpop.f32.mrf.mxu0  ;;  %v514_v31 = vadd.f32 %v1795_v15, %v1785_v6  ;;  %v583_v33 = vmul.f32 %v1808_v21, %v544_v24 }
  0xf2   :  { %v625_v32 = vsel %vm609_vm3, %v582_v23, 0.0  ;;  %v545_v34 = vmax.f32 %v513_v25, 0.0  ;;  %v557_v61 = vmax.f32 %v525_v26, 0.0  ;;  %v524_v35 = vadd.f32 %v1799_v17, %v316_v29 }
  0xf3   :  { %617 = vadd.xlane.f32.xlu0 %v616_v49  ;;  %v661_v36 = vsel %vm609_vm3, %v594_v28, 0.0  ;;  %v593_v37 = vmul.f32 %v1808_v21, %v554_v63  ;;  %v1298_v38 = vpop.f32.mrf.mxu0  ;;  %v546_v39 = vmax.f32 %v514_v31, 0.0  ;;  %v628_v40 = vsel %vm609_vm3, %v583_v33, 0.0 }
  0xf4   :  { %v584_v6 = vmul.f32 %v1808_v21, %v545_v34  ;;  %v515_v42 = vadd.f32 %v1783_v3, %v1795_v15  ;;  %v556_v43 = vmax.f32 %v524_v35, 0.0  ;;  %v527_v44 = vadd.f32 %v1298_v38, %v1799_v17 }
  0xf5   :  { %689 = vadd.xlane.f32.xlu1 %v688_v1  ;;  %v658_v45 = vsel %vm609_vm3, %v593_v37, 0.0  ;;  %v596_v46 = vmul.f32 %v1808_v21, %v557_v61  ;;  %v326_v47 = vpop.f32.mrf.mxu0  ;;  %v516_v50 = vadd.f32 %v1795_v15, %v1792_v13  ;;  %v585_v51 = vmul.f32 %v1808_v21, %v546_v39 }
  0xf6   :  { %v631_v48 = vsel %vm609_vm3, %v584_v6, 0.0  ;;  %v547_v49 = vmax.f32 %v515_v42, 0.0  ;;  %v559_v3 = vmax.f32 %v527_v44, 0.0  ;;  %v526_v52 = vadd.f32 %v1799_v17, %v326_v47 }
  0xf7   :  { %620 = vadd.xlane.f32.xlu0 %v619_v58  ;;  %v667_v53 = vsel %vm609_vm3, %v596_v46, 0.0  ;;  %v595_v59 = vmul.f32 %v1808_v21, %v556_v43  ;;  %v1301_v57 = vpop.f32.mrf.mxu0  ;;  %v517_v1 = vadd.f32 %v1789_v10, %v1795_v15  ;;  %v548_v4 = vmax.f32 %v516_v50, 0.0 }
  0xf8   :  { %v634_v13 = vsel %vm609_vm3, %v585_v51, 0.0  ;;  %v586_v5 = vmul.f32 %v1808_v21, %v547_v49  ;;  %v558_v7 = vmax.f32 %v526_v52, 0.0  ;;  %v529_v58 = vadd.f32 %v1301_v57, %v1799_v17 }
  0xf9   :  { %692 = vadd.xlane.f32.xlu1 %v691_v14  ;;  %v664_v8 = vsel %vm609_vm3, %v595_v59, 0.0  ;;  %v598_v9 = vmul.f32 %v1808_v21, %v559_v3  ;;  %v336_v11 = vpop.f32.mrf.mxu0  ;;  %v549_v55 = vmax.f32 %v517_v1, 0.0  ;;  %v519_v12 = vadd.f32 %v1797_v16, %v1795_v15 }
  0xfa   :  { %v637_v10 = vsel %vm609_vm3, %v586_v5, 0.0  ;;  %v587_v14 = vmul.f32 %v1808_v21, %v548_v4  ;;  %v561_v18 = vmax.f32 %v529_v58, 0.0  ;;  %v528_v19 = vadd.f32 %v1799_v17, %v336_v11 }
  0xfb   :  { %623 = vadd.xlane.f32.xlu0 %v622_v22  ;;  %v673_v22 = vsel %vm609_vm3, %v598_v9, 0.0  ;;  %v597_v23 = vmul.f32 %v1808_v21, %v558_v7  ;;  %v551_v24 = vmax.f32 %v519_v12, 0.0  ;;  %v518_v25 = vadd.f32 %v1795_v15, %v1803_v20 }
  0xfc   :  { %v640_v63 = vsel %vm609_vm3, %v587_v14, 0.0  ;;  %v588_v16 = vmul.f32 %v1808_v21, %v549_v55  ;;  %v560_v26 = vmax.f32 %v528_v19, 0.0  ;;  %v600_v28 = vmul.f32 %v1808_v21, %v561_v18 }
  0xfd   :  { %695 = vadd.xlane.f32.xlu1 %v694_v27  ;;  %v670_v27 = vsel %vm609_vm3, %v597_v23, 0.0  ;;  %v535_v29 = vadd.f32 %v1764_v56, %v1799_v17  ;;  %v550_v31 = vmax.f32 %v518_v25, 0.0  ;;  %v590_v33 = vmul.f32 %v1808_v21, %v551_v24 }
  0xfe   :  { %v643_v20 = vsel %vm609_vm3, %v588_v16, 0.0  ;;  %v679_v34 = vsel %vm609_vm3, %v600_v28, 0.0  ;;  %v599_v61 = vmul.f32 %v1808_v21, %v560_v26  ;;  %v521_v56 = vadd.f32 %v1815_v30, %v1795_v15 }
  0xff   :  { %626 = vadd.xlane.f32.xlu0 %v625_v32  ;;  %v520_v32 = vadd.f32 %v1795_v15, %v1824_v41  ;;  %v567_v35 = vmax.f32 %v535_v29, 0.0  ;;  %v649_v41 = vsel %vm609_vm3, %v590_v33, 0.0  ;;  %v589_v38 = vmul.f32 %v1808_v21, %v550_v31 }
 0x100   :  { %v676_v39 = vsel %vm609_vm3, %v599_v61, 0.0  ;;  %v537_v42 = vadd.f32 %v1771_v62, %v1799_v17  ;;  %v1949_v9 = vand.u32 127, %v477_v54 }
 0x101   :  { %662 = vadd.xlane.f32.xlu1 %v661_v36  ;;  %v536_v36 = vadd.f32 %v1799_v17, %v1775_v0  ;;  %v552_v37 = vmax.f32 %v520_v32, 0.0  ;;  %v553_v0 = vmax.f32 %v521_v56, 0.0  ;;  %v646_v43 = vsel %vm609_vm3, %v589_v38, 0.0 }
 0x102   :  { %v794_v12 = vadd.s32 4294967232, %v1949_v9  ;;  %v752_v18 = vadd.s32 4294967280, %v1949_v9  ;;  %v801_v19 = vadd.s32 4294967224, %v1949_v9  ;;  %v743_v54 = vsub.s32 %v1949_v9, %v1767_v60 }
 0x103   :  { %629 = vadd.xlane.f32.xlu0 %v628_v40  ;;  %v606_v40 = vmul.f32 %v1808_v21, %v567_v35  ;;  %v568_v6 = vmax.f32 %v536_v36, 0.0  ;;  %v591_v15 = vmul.f32 %v1808_v21, %v552_v37  ;;  %v592_v47 = vmul.f32 %v1808_v21, %v553_v0 }
 0x104   :  { %v759_v24 = vadd.s32 4294967272, %v1949_v9  ;;  %v1964_v25 = vsub.s32 %v794_v12, %v1767_v60  ;;  %v815_v16 = vadd.s32 4294967208, %v1949_v9  ;;  %v766_v28 = vadd.s32 4294967264, %v1949_v9 }
 0x105   :  { %659 = vadd.xlane.f32.xlu1 %v658_v45  ;;  %v697_v30 = vsel %vm609_vm3, %v606_v40, 0.0  ;;  %v607_v44 = vmul.f32 %v1808_v21, %v568_v6  ;;  %v569_v45 = vmax.f32 %v537_v42, 0.0  ;;  %v652_v46 = vsel %vm609_vm3, %v591_v15, 0.0 }
 0x106   :  { %v655_v50 = vsel %vm609_vm3, %v592_v47, 0.0  ;;  %v822_v29 = vadd.s32 4294967200, %v1949_v9  ;;  %v773_v31 = vadd.s32 4294967256, %v1949_v9  ;;  %v1975_v32 = vsub.s32 %v801_v19, %v1767_v60 }
 0x107   :  { %632 = vadd.xlane.f32.xlu0 %v631_v48  ;;  %v700_v62 = vsel %vm609_vm3, %v607_v44, 0.0  ;;  %v608_v17 = vmul.f32 %v1808_v21, %v569_v45  ;;  %v780_v33 = vadd.s32 4294967248, %v1949_v9  ;;  %v762_v35 = vsub.s32 %v759_v24, %v1767_v60 }
 0x108   :  { %v787_v36 = vadd.s32 4294967240, %v1949_v9  ;;  %v1986_v37 = vsub.s32 %v815_v16, %v1767_v60  ;;  %v1990_v40 = vsub.s32 %v822_v29, %v1767_v60  ;;  %v776_v6 = vsub.s32 %v773_v31, %v1767_v60 }
 0x109   :  { %668 = vadd.xlane.f32.xlu1 %v667_v53  ;;  %v703_v48 = vsel %vm609_vm3, %v608_v17, 0.0  ;;  %v783_v42 = vsub.s32 %v780_v33, %v1767_v60  ;;  %v829_v15 = vadd.s32 4294967192, %v1949_v9  ;;  %v843_v19 = vadd.s32 4294967176, %v1949_v9 }
 0x10a   :  { %v790_v44 = vsub.s32 %v787_v36, %v1767_v60  ;;  %vm929_vm3 = vcmask 1041409  }
 0x10b   :  { %635 = vadd.xlane.f32.xlu0 %v634_v13  ;;  %v832_v12 = vsub.s32 %v829_v15, %v1767_v60 }
 0x10d   :  { %665 = vadd.xlane.f32.xlu1 %v664_v8 }
 0x10f   :  { %638 = vadd.xlane.f32.xlu0 %v637_v10  ;;  %v745_v10 = vadd.s32 4294967288, %v1949_v9 }
 0x111   :  { %674 = vadd.xlane.f32.xlu1 %v673_v22  ;;  %v808_v22 = vadd.s32 4294967216, %v1949_v9 }
 0x113   :  { %641 = vadd.xlane.f32.xlu0 %v640_v63  ;;  %v748_v63 = vsub.s32 %v745_v10, %v1767_v60 }
 0x115   :  { %671 = vadd.xlane.f32.xlu1 %v670_v27  ;;  %v755_v27 = vsub.s32 %v752_v18, %v1767_v60 }
 0x117   :  { %644 = vadd.xlane.f32.xlu0 %v643_v20  ;;  %v1978_v20 = vsub.s32 %v808_v22, %v1767_v60 }
 0x119   :  { %680 = vadd.xlane.f32.xlu1 %v679_v34 }
 0x11b   :  { %650 = vadd.xlane.f32.xlu0 %v649_v41 }
 0x11d   :  { %677 = vadd.xlane.f32.xlu1 %v676_v39  ;;  %v769_v39 = vsub.s32 %v766_v28, %v1767_v60 }
 0x11f   :  { %647 = vadd.xlane.f32.xlu0 %v646_v43 }
 0x121   :  { %698 = vadd.xlane.f32.xlu1 %v697_v30 }
 0x123   :  { %653 = vadd.xlane.f32.xlu0 %v652_v46 }
 0x125   :  { %701 = vadd.xlane.f32.xlu1 %v700_v62 }
 0x127   :  { %656 = vadd.xlane.f32.xlu0 %v655_v50 }
 0x129   :  { %704 = vadd.xlane.f32.xlu1 %v703_v48 }
 0x174   :  { %v1922_v51 = vpop.xlane.xlu0 %611 }
 0x175   :  { %v744_v50 = vrot.slane %v1922_v51, %v743_v54 }
 0x176   :  { %v1924_v49 = vpop.xlane.xlu1 %683 }
 0x178   :  { %v1926_v3 = vpop.xlane.xlu0 %614 }
 0x179   :  { %v749_v30 = vrot.slane %v1926_v3, %v748_v63 }
 0x17a   :  { %v1928_v52 = vpop.xlane.xlu1 %686 }
 0x17b   :  { %v897_v33 = vrot.slane %v1928_v52, %v1975_v32 }
 0x17c   :  { %v1930_v53 = vpop.xlane.xlu0 %617 }
 0x17d   :  { %v756_v47 = vrot.slane %v1930_v53, %v755_v27  ;;  %v751_v53 = vsel %vm750_vm4, %v749_v30, %v744_v50 }
 0x17e   :  { %v1932_v59 = vpop.xlane.xlu1 %689 }
 0x17f   :  { %v758_v51 = vsel %vm757_vm5, %v756_v47, %v751_v53 }
 0x180   :  { %v1934_v21 = vpop.xlane.xlu0 %620 }
 0x181   :  { %v763_v48 = vrot.slane %v1934_v21, %v762_v35 }
 0x182   :  { %v1936_v57 = vpop.xlane.xlu1 %692 }
 0x183   :  { %v765_v22 = vsel %vm764_vm6, %v763_v48, %v758_v51  ;;  %v907_v52 = vrot.slane %v1936_v57, %v1986_v37 }
 0x184   :  { %v1938_v1 = vpop.xlane.xlu0 %623 }
 0x185   :  { %v770_v3 = vrot.slane %v1938_v1, %v769_v39 }
 0x186   :  { %v1940_v4 = vpop.xlane.xlu1 %695 }
 0x188   :  { %v1942_v13 = vpop.xlane.xlu0 %626 }
 0x18a   :  { %v663_v5 = vpop.xlane.xlu1 %662 }
 0x18b   :  { %v857_v41 = vrot.slane %v663_v5, %v748_v63  ;;  %v836_v5 = vadd.s32 4294967184, %v1949_v9 }
 0x18c   :  { %v1944_v7 = vpop.xlane.xlu0 %629 }
 0x18d   :  { %v784_v21 = vrot.slane %v1944_v7, %v783_v42  ;;  %v839_v63 = vsub.s32 %v836_v5, %v1767_v60 }
 0x18e   :  { %v660_v58 = vpop.xlane.xlu1 %659 }
 0x18f   :  { %v853_v34 = vrot.slane %v660_v58, %v743_v54 }
 0x190   :  { %v1946_v8 = vpop.xlane.xlu0 %632 }
 0x191   :  { %v858_v0 = vsel %vm750_vm4, %v857_v41, %v853_v34  ;;  %v791_v54 = vrot.slane %v1946_v8, %v790_v44  ;;  %vm708_vm4 = vcmp.lt.s32.totalorder %v1949_v9, 16 }
 0x192   :  { %v669_v11 = vpop.xlane.xlu1 %668 }
 0x193   :  { %v867_v62 = vrot.slane %v669_v11, %v762_v35  ;;  %v777_v11 = vrot.slane %v1942_v13, %v776_v6  ;;  %v772_v13 = vsel %vm771_vm7, %v770_v3, %v765_v22 }
 0x194   :  { %v1951_v55 = vpop.xlane.xlu0 %635 }
 0x195   :  { %v798_v16 = vrot.slane %v1951_v55, %v1964_v25  ;;  %v779_v29 = vsel %vm778_vm8, %v777_v11, %v772_v13 }
 0x196   :  { %v666_v14 = vpop.xlane.xlu1 %665  ;;  %v786_v34 = vsel %vm785_vm9, %v784_v21, %v779_v29 }
 0x197   :  { %v862_v56 = vrot.slane %v666_v14, %v755_v27 }
 0x198   :  { %v1958_v23 = vpop.xlane.xlu0 %638 }
 0x199   :  { %v863_v45 = vsel %vm757_vm5, %v862_v56, %v858_v0  ;;  %v805_v8 = vrot.slane %v1958_v23, %v1975_v32  ;;  %vm933_vm5 = vcmask 1041408  }
 0x19a   :  { %v1968_v26 = vpop.xlane.xlu1 %674  ;;  %v868_v58 = vsel %vm764_vm6, %v867_v62, %v863_v45 }
 0x19b   :  { %v877_v18 = vrot.slane %v1968_v26, %v776_v6  ;;  %v892_v26 = vrot.slane %v1924_v49, %v1964_v25  ;;  %v902_v49 = vrot.slane %v1932_v59, %v1978_v20  ;;  %v793_v25 = vsel %vm792_vm10, %v791_v54, %v786_v34 }
 0x19c   :  { %v1981_v61 = vpop.xlane.xlu0 %641  ;;  %v800_v32 = vsel %vm799_vm11, %v798_v16, %v793_v25  ;;  %v912_v59 = vrot.slane %v1940_v4, %v1990_v40  ;;  %v846_v6 = vsub.s32 %v843_v19, %v1767_v60 }
 0x19d   :  { %v812_v55 = vrot.slane %v1981_v61, %v1978_v20  ;;  %v807_v20 = vsel %vm806_vm12, %v805_v8, %v800_v32 }
 0x19e   :  { %v672_v38 = vpop.xlane.xlu1 %671 }
 0x19f   :  { %v872_v46 = vrot.slane %v672_v38, %v769_v39 }
 0x1a0   :  { %v1995_v43 = vpop.xlane.xlu0 %644 }
 0x1a1   :  { %v873_v14 = vsel %vm771_vm7, %v872_v46, %v868_v58  ;;  %v819_v23 = vrot.slane %v1995_v43, %v1986_v37 }
 0x1a2   :  { %v681_v17 = vpop.xlane.xlu1 %680  ;;  %v878_v7 = vsel %vm778_vm8, %v877_v18, %v873_v14 }
 0x1a3   :  { %v887_v27 = vrot.slane %v681_v17, %v790_v44 }
 0x1a4   :  { %v651_v10 = vpop.xlane.xlu0 %650 }
 0x1a5   :  { %v833_v45 = vrot.slane %v651_v10, %v832_v12 }
 0x1a6   :  { %v678_v1 = vpop.xlane.xlu1 %677 }
 0x1a7   :  { %v882_v24 = vrot.slane %v678_v1, %v783_v42  ;;  %v814_v42 = vsel %vm813_vm13, %v812_v55, %v807_v20 }
 0x1a8   :  { %v648_v28 = vpop.xlane.xlu0 %647  ;;  %v821_v0 = vsel %vm820_vm14, %v819_v23, %v814_v42 }
 0x1a9   :  { %v883_v31 = vsel %vm785_vm9, %v882_v24, %v878_v7  ;;  %v826_v41 = vrot.slane %v648_v28, %v1990_v40 }
 0x1aa   :  { %v888_v35 = vsel %vm792_vm10, %v887_v27, %v883_v31  ;;  %v699_v36 = vpop.xlane.xlu1 %698 }
 0x1ab   :  { %v893_v56 = vsel %vm799_vm11, %v892_v26, %v888_v35  ;;  %v917_v15 = vrot.slane %v699_v36, %v832_v12  ;;  %v828_v30 = vsel %vm827_vm15, %v826_v41, %v821_v0 }
 0x1ac   :  { %v898_v61 = vsel %vm806_vm12, %v897_v33, %v893_v56  ;;  %v654_v38 = vpop.xlane.xlu0 %653  ;;  %v835_v62 = vsel %vm834_vm0, %v833_v45, %v828_v30 }
 0x1ad   :  { %v903_v39 = vsel %vm813_vm13, %v902_v49, %v898_v61  ;;  %v840_v4 = vrot.slane %v654_v38, %v839_v63 }
 0x1ae   :  { %v908_v57 = vsel %vm820_vm14, %v907_v52, %v903_v39  ;;  %v702_v37 = vpop.xlane.xlu1 %701 }
 0x1af   :  { %v913_v43 = vsel %vm827_vm15, %v912_v59, %v908_v57  ;;  %v922_v40 = vrot.slane %v702_v37, %v839_v63  ;;  %v842_v50 = vsel %vm841_vm1, %v840_v4, %v835_v62 }
 0x1b0   :  { %v657_v44 = vpop.xlane.xlu0 %656  ;;  %v918_v46 = vsel %vm834_vm0, %v917_v15, %v913_v43 }
 0x1b1   :  { %v847_v60 = vrot.slane %v657_v44, %v846_v6  ;;  %v923_v48 = vsel %vm841_vm1, %v922_v40, %v918_v46 }
 0x1b2   :  { %v705_v47 = vpop.xlane.xlu1 %704 }
 0x1b3   :  { %v927_v17 = vrot.slane %v705_v47, %v846_v6  ;;  %v849_v5 = vsel %vm848_vm2, %v847_v60, %v842_v50 }
 0x1b5   :  { %v928_v3 = vsel %vm848_vm2, %v927_v17, %v923_v48 }
 0x1b6   :  { %v930_v58 = vsel %vm929_vm3, %v928_v3, %v849_v5 }
 0x1b7   :  { %v932_v53 = vsel %vm708_vm4, %v930_v58, -1e+30 }
 0x1b8   :  { %v934_v11 = vsel %vm933_vm5, %v932_v53, -inf }
 0x1b9   :  { %935 = vmax.xlane.f32.xlu0 %v934_v11 }
 0x242   :  { %v936_v12 = vpop.xlane.xlu0 %935 }
 0x243   :  { %v937_v10 = vsub.f32 %v932_v53, %v936_v12 }
 0x245   :  { %v938_v14 = vmul.f32 1.442695, %v937_v10 }
 0x247   :  { %1412 = vpow2.f32 %v938_v14 }
 0x254   :  { %v1413_v51 = vpop.eup %1412 }
 0x255   :  { %v940_v21 = vsel %vm933_vm5, %v1413_v51, 0.0 }
 0x256   :  { %941 = vadd.xlane.f32.xlu1 %v940_v21 }
 0x2df   :  { %v942_v18 = vpop.xlane.xlu1 %941 }
 0x2e0   :  { %1414 = vrcp.f32 %v942_v18 }
 0x2ed   :  { %v1415_v1 = vpop.eup %1414 }
 0x2ee   :  { %v944_v19 = vmul.f32 %v1415_v1, %v1413_v51 }
 0x2f0   :  { %v952_v9 = vrot.slane %v944_v19, %v1781_v2  ;;  %1117 = vst [vmem:[#allocation4] sm:$0x3] %v944_v19 }
 0x2f2   :  { %v953_v22 = vcombine.high %v952_v9, %v952_v9  ;;  %v960_v54 = vrot.slane %v952_v9, %v1781_v2 }
 0x2f4   :  { %1362 = vmatmul.mubr.f32.vlgmr.msra.gmra.mxu1 %v960_v54  ;;  %v967_v24 = vrot.slane %v953_v22, %v1781_v2 }
 0x2f6   :  { %1397 = vmatmul.mubr.f32.vlgmr.msra.gmra.mxu0 %v967_v24 }
 0x2f7   :  { %1427 = shalt.err (!%p1424_p4)
}
 0x2f8   :  { %1137 = dma.vmem_to_hbm [thread:$0]  %s1135_s13, 32, %s2074_s7, [#allocation5]   ;;  %vm1115_vm6 = vcmask 254976  }
 0x2f9   :  { %s1464_s16 = smov [#allocation2]  }
 0x2fa   :  { %s1124_s17 = sshll.u32 %s1464_s16, 4  ;;  %s1125_s17 = int_to_ptr.vmem [resolvable:$true] %s1124_s17 }
 0x2fb   :  { %s1436_s18 = scalar_lea.vmem %s1125_s17, 32  ;;  %p1441_p6 = scmp.lt.s32.totalorder %s1125_s17, %s1125_s17 }
 0x2fc   :  { %p1437_p5 = scmp.ne.s32.totalorder %s1125_s17, %s1436_s18  ;;  %p1442_p7 = scmp.lt.s32.totalorder %s1436_s18, %s1436_s18 }
 0x2fe   :  { %p1443_p8 = por %p1442_p7, %p1441_p6 }
 0x300   :  { %p1444_p9 = pnand %p1443_p8, %p1437_p5 }
 0x3b4   :  { %v1036_v63 = vpop.f32.mrf.mxu1 }
 0x3b6   :  { %v1363_v13 = vpop.f32.mrf.mxu1  ;;  %v1106_v2 = vpop.f32.mrf.mxu0 }
 0x3b7   :  { %v1112_v16 = vrot.slane %v1106_v2, 7 }
 0x3b8   :  { %v1398_v27 = vpop.f32.mrf.mxu0 }
 0x3b9   :  { %v1113_v7 = vsel %vm929_vm3, %v1112_v16, %v1036_v63 }
 0x3ba   :  { %1116 = vst.msk [vmem:[#allocation2] sm:$0x3] %vm1115_vm6, %v1113_v7 }
 0x3bb   :  { %1447 = shalt.err (!%p1444_p9)
}
 0x3bc   :  { %1127 = dma.vmem_to_hbm [thread:$0]  %s1125_s17, 32, %s2073_s6, [#allocation3]  }
 0x3bd   :  { %1456 = dma.done.wait [#allocation3], 32  }
 0x3be   :  { %1457 = vsyncadd [#allocation3], 4294967264 }
 0x3bf   :  { %1458 = dma.done.wait [#allocation5], 32  }
 0x3c0   :  { %1459 = vsyncadd [#allocation5], 4294967264 }
 0x3c1   :  { %1144 = vsyncpa [#allocation3], 1 }
 0x3c2   :  { %1145 = vsyncpa [#allocation5], 1 }

</bundles_post_ra>
